<compile_context>
chip_gen: v5e
topology: v5e:2x2
jax: 0.10.0
libtpu: 0.0.40
codegen_flags: <defaults>
</compile_context>

<pallas_src>
import jax
import jax.numpy as jnp
from jax.experimental import pallas as pl
from jax.experimental.pallas import tpu as pltpu


def _round_up(x, m):
    return (x + m - 1) // m * m


def _prepool_kernel(x_ref, w1_ref, b1_ref, w2_ref, b2_ref, slab_ref):
    h_dim = w1_ref.shape[1]
    o_dim = w2_ref.shape[1]

    # layer1: Linear(D_in -> H) + ReLU. bf16 MXU matmul, f32 accumulate/epilogue.
    h = jnp.dot(x_ref[...], w1_ref[...], preferred_element_type=jnp.float32)
    h = jnp.maximum(h + b1_ref[...], 0.0)                       # (tile, H) f32

    # layer2: Linear(H -> 64) + ReLU.
    o = jnp.dot(h.astype(w2_ref.dtype), w2_ref[...],
                preferred_element_type=jnp.float32)
    o = jnp.maximum(o + b2_ref[...], 0.0)                       # (tile, 64) f32

    # Lane-dense packed writeback: [out | x_old | zero pad] -> 128-lane multiple.
    pieces = [o.astype(slab_ref.dtype), h.astype(slab_ref.dtype)]
    pad_w = slab_ref.shape[-1] - (o_dim + h_dim)
    if pad_w:
        pieces.append(jnp.zeros((o.shape[0], pad_w), dtype=slab_ref.dtype))
    slab_ref[...] = jnp.concatenate(pieces, axis=-1)


def simple_prepool_net(x, w1, b1, w2, b2, *, tile_rows=2048,
                       compute_dtype=jnp.bfloat16):
    """x: (B, S, D_in). Returns (out, x_old) in float32, matching the PyTorch forward."""
    B, S, D_in = x.shape
    H = w1.shape[1]
    D_out = w2.shape[1]
    N = B * S

    # Row tile: multiple of 8 (sublane rule); 2048 (multiple of 256) when N is
    # large. Pad rows in the wrapper so every tile is full-size and uniform.
    tile = min(tile_rows, _round_up(N, 8))
    n_pad = _round_up(N, tile)
    grid_rows = n_pad // tile

    slab_w = _round_up(D_out + H, 128)

    # bf16 stream for the dominant x read (MXU-native inputs). In a real
    # pipeline the caller should hand bf16 straight from the embedding lookup
    # so this cast fuses upstream instead of being a standalone copy.
    x2d = x.reshape(N, D_in).astype(compute_dtype)
    if n_pad != N:
        x2d = jnp.pad(x2d, ((0, n_pad - N), (0, 0)))
    w1c = w1.astype(compute_dtype)
    w2c = w2.astype(compute_dtype)
    b1_2d = b1.reshape(1, H).astype(jnp.float32)
    b2_2d = b2.reshape(1, D_out).astype(jnp.float32)

    slab = pl.pallas_call(
        _prepool_kernel,
        out_shape=jax.ShapeDtypeStruct((n_pad, slab_w), jnp.float32),
        grid=(grid_rows,),
        in_specs=[
            pl.BlockSpec((tile, D_in), lambda i: (i, 0)),   # streamed row tiles
            pl.BlockSpec((D_in, H), lambda i: (0, 0)),      # resident weights
            pl.BlockSpec((1, H), lambda i: (0, 0)),
            pl.BlockSpec((H, D_out), lambda i: (0, 0)),
            pl.BlockSpec((1, D_out), lambda i: (0, 0)),
        ],
        out_specs=pl.BlockSpec((tile, slab_w), lambda i: (i, 0)),
        compiler_params=pltpu.CompilerParams(
            dimension_semantics=("parallel",),  # megacore on v7x; harmless elsewhere
            vmem_limit_bytes=32 * 1024 * 1024,
        ),
    )(x2d, w1c, b1_2d, w2c, b2_2d)

    out = slab[:N, :D_out].reshape(B, S, D_out)
    x_old = slab[:N, D_out:D_out + H].reshape(B, S, H)
    return out, x_old


def _reference(x, w1, b1, w2, b2):
    x_old = jnp.maximum(jnp.einsum("bsd,dh->bsh", x, w1) + b1, 0.0)
    out = jnp.maximum(jnp.einsum("bsh,ho->bso", x_old, w2) + b2, 0.0)
    return out, x_old


if __name__ == "__main__":
    # Small shapes consistent with the module:
    #   batch=2, seq=8, glove embedding dim=300, output_dim_model=32, final=64
    B, S, D_IN, H, D_OUT = 2, 8, 300, 32, 64

    key = jax.random.PRNGKey(0)
    kx, k1, k2, k3, k4 = jax.random.split(key, 5)

    x = jax.random.normal(kx, (B, S, D_IN), dtype=jnp.float32)
    w1 = jax.random.uniform(k1, (D_IN, H), jnp.float32, -1.0, 1.0) / jnp.sqrt(D_IN)
    b1 = jax.random.uniform(k2, (H,), jnp.float32, -1.0, 1.0) / jnp.sqrt(D_IN)
    w2 = jax.random.uniform(k3, (H, D_OUT), jnp.float32, -1.0, 1.0) / jnp.sqrt(H)
    b2 = jax.random.uniform(k4, (D_OUT,), jnp.float32, -1.0, 1.0) / jnp.sqrt(H)

    out, x_old = simple_prepool_net(x, w1, b1, w2, b2)
    jax.block_until_ready((out, x_old))

    ref_out, ref_old = _reference(x, w1, b1, w2, b2)
    assert out.shape == (B, S, D_OUT) and x_old.shape == (B, S, H)
    # bf16 input streams -> loosened tolerance vs the f32 reference.
    assert jnp.allclose(out, ref_out, atol=5e-2, rtol=5e-2)
    assert jnp.allclose(x_old, ref_old, atol=5e-2, rtol=5e-2)

    # Ragged row count (N = 10) to exercise the wrapper-side row padding path.
    x_r = x[:, :5, :]
    out_r, old_r = simple_prepool_net(x_r, w1, b1, w2, b2)
    jax.block_until_ready((out_r, old_r))
    ref_out_r, ref_old_r = _reference(x_r, w1, b1, w2, b2)
    assert out_r.shape == (B, 5, D_OUT) and old_r.shape == (B, 5, H)
    assert jnp.allclose(out_r, ref_out_r, atol=5e-2, rtol=5e-2)
    assert jnp.allclose(old_r, ref_old_r, atol=5e-2, rtol=5e-2)

    print("KERNEL_OK")
</pallas_src>

<mosaic_0001>
module attributes {stable_mosaic.version = 11 : i64} {
  func.func @_prepool_kernel(%arg0: i32, %arg1: memref<16x300xbf16, #tpu.memory_space<vmem>>, %arg2: memref<300x32xbf16, #tpu.memory_space<vmem>>, %arg3: memref<1x32xf32, #tpu.memory_space<vmem>>, %arg4: memref<32x64xbf16, #tpu.memory_space<vmem>>, %arg5: memref<1x64xf32, #tpu.memory_space<vmem>>, %arg6: memref<16x128xf32, #tpu.memory_space<vmem>>) attributes {dimension_semantics = [#tpu.dimension_semantics<parallel>], iteration_bounds = array<i64: 1>, scalar_prefetch = 0 : i64, scratch_operands = 0 : i64, tpu.core_type = #tpu.core_type<tc>, window_params = [{transform_indices = @transform_0, window_bounds = array<i64: 16, 300>}, {pipeline_mode = #tpu.pipeline_mode<synchronous>, transform_indices = @transform_1, window_bounds = array<i64: 300, 32>}, {pipeline_mode = #tpu.pipeline_mode<synchronous>, transform_indices = @transform_2, window_bounds = array<i64: 1, 32>}, {pipeline_mode = #tpu.pipeline_mode<synchronous>, transform_indices = @transform_3, window_bounds = array<i64: 32, 64>}, {pipeline_mode = #tpu.pipeline_mode<synchronous>, transform_indices = @transform_4, window_bounds = array<i64: 1, 64>}, {transform_indices = @transform_5, window_bounds = array<i64: 16, 128>}]} {
    %c0 = arith.constant 0 : index
    %c0_0 = arith.constant 0 : index
    %0 = vector.load %arg1[%c0, %c0_0] : memref<16x300xbf16, #tpu.memory_space<vmem>>, vector<16x300xbf16>
    %c0_1 = arith.constant 0 : index
    %c0_2 = arith.constant 0 : index
    %1 = vector.load %arg2[%c0_1, %c0_2] : memref<300x32xbf16, #tpu.memory_space<vmem>>, vector<300x32xbf16>
    %cst = arith.constant dense<0.000000e+00> : vector<16x32xf32>
    %2 = tpu.matmul %0, %1, %cst {dimension_numbers = #tpu.dot_dimension_numbers<[1], [0], [0], [1], [0, 0, 1, 1], [], []>} : vector<16x300xbf16>, vector<300x32xbf16>, vector<16x32xf32> -> vector<16x32xf32>
    %c0_3 = arith.constant 0 : index
    %c0_4 = arith.constant 0 : index
    %3 = vector.load %arg3[%c0_3, %c0_4] : memref<1x32xf32, #tpu.memory_space<vmem>>, vector<1x32xf32>
    %4 = vector.broadcast %3 : vector<1x32xf32> to vector<16x32xf32>
    %5 = arith.addf %2, %4 : vector<16x32xf32>
    %cst_5 = arith.constant 0.000000e+00 : f32
    %6 = vector.broadcast %cst_5 : f32 to vector<16x32xf32>
    %7 = arith.maximumf %5, %6 : vector<16x32xf32>
    %8 = arith.truncf %7 : vector<16x32xf32> to vector<16x32xbf16>
    %c0_6 = arith.constant 0 : index
    %c0_7 = arith.constant 0 : index
    %9 = vector.load %arg4[%c0_6, %c0_7] : memref<32x64xbf16, #tpu.memory_space<vmem>>, vector<32x64xbf16>
    %cst_8 = arith.constant dense<0.000000e+00> : vector<16x64xf32>
    %10 = tpu.matmul %8, %9, %cst_8 {dimension_numbers = #tpu.dot_dimension_numbers<[1], [0], [0], [1], [0, 0, 1, 1], [], []>} : vector<16x32xbf16>, vector<32x64xbf16>, vector<16x64xf32> -> vector<16x64xf32>
    %c0_9 = arith.constant 0 : index
    %c0_10 = arith.constant 0 : index
    %11 = vector.load %arg5[%c0_9, %c0_10] : memref<1x64xf32, #tpu.memory_space<vmem>>, vector<1x64xf32>
    %12 = vector.broadcast %11 : vector<1x64xf32> to vector<16x64xf32>
    %13 = arith.addf %10, %12 : vector<16x64xf32>
    %cst_11 = arith.constant 0.000000e+00 : f32
    %14 = vector.broadcast %cst_11 : f32 to vector<16x64xf32>
    %15 = arith.maximumf %13, %14 : vector<16x64xf32>
    %cst_12 = arith.constant 0.000000e+00 : f32
    %16 = vector.broadcast %cst_12 : f32 to vector<16x32xf32>
    %17 = tpu.concatenate %15, %7, %16 in 1 : vector<16x64xf32>, vector<16x32xf32>, vector<16x32xf32> -> vector<16x128xf32>
    %c0_13 = arith.constant 0 : index
    %c0_14 = arith.constant 0 : index
    %18 = vector.load %arg6[%c0_13, %c0_14] : memref<16x128xf32, #tpu.memory_space<vmem>>, vector<16x128xf32>
    tpu.vector_store %arg6[%c0_13, %c0_14], %17 {strides = array<i32>} : memref<16x128xf32, #tpu.memory_space<vmem>>, vector<16x128xf32>,
    return
  }
  func.func @transform_0(%arg0: i32) -> (i32, i32) {
    %c0_i32 = arith.constant 0 : i32
    %c0_i32_0 = arith.constant 0 : i32
    return %arg0, %c0_i32 : i32, i32
  }
  func.func @transform_1(%arg0: i32) -> (i32, i32) {
    %c0_i32 = arith.constant 0 : i32
    %c0_i32_0 = arith.constant 0 : i32
    %c0_i32_1 = arith.constant 0 : i32
    return %c0_i32, %c0_i32_0 : i32, i32
  }
  func.func @transform_2(%arg0: i32) -> (i32, i32) {
    %c0_i32 = arith.constant 0 : i32
    %c0_i32_0 = arith.constant 0 : i32
    %c0_i32_1 = arith.constant 0 : i32
    return %c0_i32, %c0_i32_0 : i32, i32
  }
  func.func @transform_3(%arg0: i32) -> (i32, i32) {
    %c0_i32 = arith.constant 0 : i32
    %c0_i32_0 = arith.constant 0 : i32
    %c0_i32_1 = arith.constant 0 : i32
    return %c0_i32, %c0_i32_0 : i32, i32
  }
  func.func @transform_4(%arg0: i32) -> (i32, i32) {
    %c0_i32 = arith.constant 0 : i32
    %c0_i32_0 = arith.constant 0 : i32
    %c0_i32_1 = arith.constant 0 : i32
    return %c0_i32, %c0_i32_0 : i32, i32
  }
  func.func @transform_5(%arg0: i32) -> (i32, i32) {
    %c0_i32 = arith.constant 0 : i32
    %c0_i32_0 = arith.constant 0 : i32
    return %arg0, %c0_i32 : i32, i32
  }
}

</mosaic_0001>

<bundles_post_ra>
// kernel: tpu_custom_call.1
= control target key start
LH: loop header
LB: loop body
LE: loop exit
PB: predicated region body
PF: predicated region fallthrough
CT: control target
= control target key end

     0   :  { %vm200_vm0 = vcmask 1045504   ;;  %s604_s0 = inlined_call_operand.vmem [shape: bf16[16,300], index: 0, kind: input, shape index: {}]   ;;  %s605_s1 = inlined_call_operand.vmem [shape: bf16[300,32], index: 1, kind: input, shape index: {}]   ;;  %s606_s2 = inlined_call_operand.vmem [shape: f32[1,32], index: 2, kind: input, shape index: {}]   ;;  %s607_s3 = inlined_call_operand.vmem [shape: bf16[32,64], index: 3, kind: input, shape index: {}]   ;;  %s608_s4 = inlined_call_operand.vmem [shape: f32[1,64], index: 4, kind: input, shape index: {}]   ;;  %s609_s5 = inlined_call_operand.hbm [shape: f32[16,128], index: 5, kind: output, shape index: {}]  }
   0x1   :  { %v431_v0 = vld [vmem:[%s605_s1 + $0x38] sm:$0xff]  ;;  %v430_v2 = vld [vmem:[%s605_s1 + $0x30] sm:$0xff]  ;;  %v429_v8 = vld [vmem:[%s605_s1 + $0x28] sm:$0xff] }
   0x2   :  { %v439_v1 = vld [vmem:[%s605_s1 + $0x78] sm:$0xff]  ;;  %204 = vmatpush.bf16.msra.mxu0 %v431_v0  ;;  %v438_v3 = vld [vmem:[%s605_s1 + $0x70] sm:$0xff]  ;;  %v437_v9 = vld [vmem:[%s605_s1 + $0x68] sm:$0xff] }
   0x3   :  { %218 = vmatpush.bf16.msra.mxu1 %v439_v1  ;;  %v409_v4 = vld [vmem:[%s605_s1 + $0x90] sm:$0xf]  ;;  %v442_v5 = vld [vmem:[%s605_s1 + $0x90] sm:$0x30]  ;;  %v441_v10 = vld [vmem:[%s605_s1 + $0x88] sm:$0xff] }
   0x4   :  { %v410_v6 = vor.u32 %v442_v5, %v409_v4 }
   0x6   :  { %v202_v7 = vsel %vm200_vm0, %v410_v6, 0  ;;  %205 = vmatpush.bf16.msra.mxu0 %v430_v2 }
   0x7   :  { %219 = vmatpush.bf16.msra.mxu1 %v438_v3  ;;  %237 = vmatpush.bf16.msra.mxu2 %v202_v7 }
   0x8   :  { %10 = vsyncpa [#allocation3], 0  ;;  %v428_v11 = vld [vmem:[%s605_s1 + $0x20] sm:$0xff]  ;;  %v333_v14 = vld [vmem:[%s604_s0 + $0x8] sm:$0xf]  ;;  %vm196_vm1 = vcmask 359424  }
   0x9   :  { %v436_v12 = vld [vmem:[%s605_s1 + $0x60] sm:$0xff]  ;;  %v423_v15 = vld [vmem:[%s604_s0 + $0x10] sm:$0xf0]  ;;  %v427_v16 = vld [vmem:[%s605_s1 + $0x18] sm:$0xff]  ;;  %vm269_vm2 = vcmask 261120   ;;  %vm297_vm3 = vcmask 523264  }
   0xa   :  { %206 = vmatpush.bf16.msra.mxu0 %v429_v8  ;;  %v440_v13 = vld [vmem:[%s605_s1 + $0x80] sm:$0xff]  ;;  %v435_v17 = vld [vmem:[%s605_s1 + $0x58] sm:$0xff]  ;;  %v334_v18 = vor.u32 %v423_v15, %v333_v14  ;;  %v426_v19 = vld [vmem:[%s605_s1 + $0x10] sm:$0xff]  ;;  %vm300_vm4 = vcmask 785408   ;;  %s478_s25 = smov [#allocation2]   ;;  %s311_s29 = sshll.u32 %s609_s5, 4  ;;  %s312_s29 = int_to_ptr.hbm [resolvable:$true] %s311_s29 }
   0xb   :  { %220 = vmatpush.bf16.msra.mxu1 %v437_v9  ;;  %238 = vmatpush.bf16.msra.mxu2 %v441_v10  ;;  %v434_v20 = vld [vmem:[%s605_s1 + $0x50] sm:$0xff]  ;;  %v425_v21 = vld [vmem:[%s605_s1 + $0x8] sm:$0xff]  ;;  %v424_v23 = vld [vmem:[%s605_s1] sm:$0xff]  ;;  %s309_s26 = sshll.u32 %s478_s25, 4  ;;  %s480_s30 = smov 8   ;;  %s310_s26 = int_to_ptr.vmem [resolvable:$true] %s309_s26 }
   0xc   :  { %v433_v22 = vld [vmem:[%s605_s1 + $0x48] sm:$0xff]  ;;  %v432_v24 = vld [vmem:[%s605_s1 + $0x40] sm:$0xff]  ;;  %v327_v28 = vld [vmem:[%s604_s0 + $0xc] sm:$0xf0] }
   0xd   :  { %v325_v25 = vld [vmem:[%s604_s0] sm:$0xf]  ;;  %v422_v26 = vld [vmem:[%s604_s0 + $0x8] sm:$0xf0]  ;;  %v421_v27 = vld [vmem:[%s604_s0 + $0x4] sm:$0xf] }
   0xe   :  { %207 = vmatpush.bf16.msra.mxu0 %v428_v11  ;;  %v326_v29 = vor.u32 %v422_v26, %v325_v25  ;;  %v330_v30 = vor.u32 %v421_v27, %v327_v28  ;;  %v444_v31 = vld [vmem:[%s607_s3 + $0x8] sm:$0xff]  ;;  %v443_v32 = vld [vmem:[%s607_s3] sm:$0xff]  ;;  %s477_s0 = smov 64  }
   0xf   :  { %221 = vmatpush.bf16.msra.mxu1 %v436_v12  ;;  %239 = vmatpush.bf16.msra.mxu2 %v440_v13  ;;  %v449_v33 = vld [vmem:[%s606_s2] ss:$0 sm:$0xff] }
  0x10   :  { %279 = vmatpush.bf16.msra.mxu3 %v444_v31  ;;  %v450_v49 = vld [vmem:[%s608_s4] ss:$0 sm:$0xff]  ;;  %s479_s4 = smov 128  }
  0x12   :  { %208 = vmatpush.bf16.msra.mxu0 %v427_v16  ;;  %411 = vmatmul.msk.bf16.vlgmr.msra.gmra.mxu2 %vm196_vm1, %v334_v18 }
  0x13   :  { %222 = vmatpush.bf16.msra.mxu1 %v435_v17 }
  0x14   :  { %280 = vmatpush.bf16.msra.mxu3 %v443_v32 }
  0x16   :  { %209 = vmatpush.bf16.msra.mxu0 %v426_v19 }
  0x17   :  { %223 = vmatpush.bf16.msra.mxu1 %v434_v20 }
  0x1a   :  { %210 = vmatpush.bf16.msra.mxu0 %v425_v21 }
  0x1b   :  { %224 = vmatpush.bf16.msra.mxu1 %v433_v22 }
  0x1e   :  { %211 = vmatpush.bf16.msra.mxu0 %v424_v23 }
  0x1f   :  { %225 = vmatpush.bf16.msra.mxu1 %v432_v24 }
  0x21   :  { %212 = vmatmul.bf16.vlgmr.msra.gmra.mxu0 %v326_v29 }
  0x22   :  { %226 = vmatmul.bf16.vlgmr.msra.gmra.mxu1 %v330_v30 }
  0x95   :  { %v241_v37 = vpop.f32.mrf.mxu2 }
  0x9d   :  { %v243_v45 = vpop.f32.mrf.mxu2 }
  0x9e   :  { %v213_v34 = vpop.f32.mrf.mxu0 }
  0x9f   :  { %v227_v35 = vpop.f32.mrf.mxu1  ;;  %v214_v36 = vadd.f32 %v449_v33, %v213_v34 }
  0xa1   :  { %v228_v38 = vadd.f32 %v227_v35, %v214_v36 }
  0xa3   :  { %v242_v39 = vadd.f32 %v241_v37, %v228_v38 }
  0xa5   :  { %v246_v40 = vmax.f32 %v242_v39, 0.0 }
  0xa6   :  { %v215_v41 = vpop.f32.mrf.mxu0 }
  0xa7   :  { %v216_v42 = vadd.f32 %v449_v33, %v215_v41  ;;  %291 = vrot.lane.b32.xlu0 %v246_v40, %s477_s0  ;;  %v229_v43 = vpop.f32.mrf.mxu1 }
  0xa9   :  { %v230_v44 = vadd.f32 %v229_v43, %v216_v42 }
  0xab   :  { %v244_v46 = vadd.f32 %v243_v45, %v230_v44 }
  0xad   :  { %v247_v47 = vmax.f32 %v244_v46, 0.0 }
  0xaf   :  { %v248_v48 = vpack.c.bf16 %v247_v47, %v246_v40  ;;  %293 = vrot.lane.b32.xlu0 %v247_v47, %s477_s0 }
  0xb1   :  { %420 = vmatmul.msk.bf16.vlgmr.msra.gmra.mxu3 %vm269_vm2, %v248_v48 }
 0x119   :  { %v292_v52 = vpop.permute.xlu0 %291 }
 0x121   :  { %v294_v59 = vpop.permute.xlu0 %293 }
 0x134   :  { %v282_v50 = vpop.f32.mrf.mxu3 }
 0x135   :  { %v283_v51 = vadd.f32 %v450_v49, %v282_v50 }
 0x137   :  { %v287_v53 = vmax.f32 %v283_v51, 0.0 }
 0x139   :  { %v298_v54 = vsel %vm297_vm3, %v287_v53, %v292_v52 }
 0x13a   :  { %v301_v55 = vsel %vm300_vm4, %v298_v54, 0.0 }
 0x13b   :  { %303 = vst [vmem:[#allocation2] sm:$0xff] %v301_v55 }
 0x13c   :  { %v284_v56 = vpop.f32.mrf.mxu3 }
 0x13d   :  { %v285_v57 = vadd.f32 %v450_v49, %v284_v56 }
 0x13f   :  { %v288_v58 = vmax.f32 %v285_v57, 0.0 }
 0x141   :  { %v299_v60 = vsel %vm297_vm3, %v288_v58, %v294_v59 }
 0x142   :  { %v302_v61 = vsel %vm300_vm4, %v299_v60, 0.0 }
 0x143   :  { %304 = vst [vmem:[#allocation2 + $0x8] sm:$0xff] %v302_v61 }
 0x144   :  { %317 = dma.vmem_to_hbm [thread:$0]  %s310_s26, 256, %s312_s29, [#allocation3], %s479_s4, %s479_s4, %s480_s30  }
 0x145   :  { %475 = dma.done.wait [#allocation3], 256  }
 0x146   :  { %476 = vsyncadd [#allocation3], 4294967040 }
 0x147   :  { %322 = vsyncpa [#allocation3], 1 }

</bundles_post_ra>
